<compile_context>
chip_gen: v7x
topology: tpu7x:2x2x1
jax: 0.10.0
libtpu: 0.0.40
codegen_flags: <defaults>
</compile_context>

<pallas_src>
import functools

import jax
import jax.numpy as jnp
from jax.experimental import pallas as pl
from jax.experimental.pallas import tpu as pltpu

PLANES = 3      # in_channels == out_channels == groups
KSIZE = 3       # kernel_size
NPOINTS = 4     # n_points
BN_EPS = 1e-5


# ---------------------------------------------------------------------------
# SMPConv.make_kernels — parameter preparation (plain JAX glue, tiny tensors)
# ---------------------------------------------------------------------------
def make_kernels(weight_coord, radius, weights):
    # rel_pos(KSIZE): (1, 2, K, K), meshgrid 'ij'
    lin = jnp.linspace(-1.0, 1.0, KSIZE)
    g0, g1 = jnp.meshgrid(lin, lin, indexing="ij")
    kernel_coord = jnp.stack([g0, g1], axis=0)[None]                 # (1,2,K,K)

    kc = kernel_coord.reshape(1, 2, -1).transpose(0, 2, 1)           # (1,K*K,2)
    diff = weight_coord[:, :, None, :] - kc                          # (1,n,K*K,2)
    diff = jnp.transpose(diff, (0, 1, 3, 2)).reshape(1, NPOINTS, 2, KSIZE, KSIZE)
    diff = jax.nn.relu(1.0 - jnp.sum(jnp.abs(diff), axis=2) / radius)  # (1,n,K,K)

    kernels = jnp.matmul(weights, diff.reshape(1, NPOINTS, -1))      # (1,planes,K*K)
    kernels = kernels.reshape(PLANES, KSIZE, KSIZE)                  # (planes,K,K)
    kernels = jnp.flip(jnp.transpose(kernels, (0, 2, 1)), axis=1)    # permute+flip
    return kernels                                                   # (C, K, K)


# ---------------------------------------------------------------------------
# Pallas kernel: single program over the whole (N*C, H*W) slab.
# Depthwise 3x3 conv (pad=1, stride=1) + BN (batch stats) + ReLU.
# ---------------------------------------------------------------------------
def _smpconv_bn_relu_kernel(x_ref, w_ref, oh_ref, gb_ref, out_ref, *, N, C, H, W, K):
    # x_ref:   (N*C, H*W)  VMEM — row r = sample r//C, channel r%C, flat image
    # w_ref:   (N*C, K*K)  VMEM — per-row depthwise taps (row's channel = r%C)
    # oh_ref:  (N*C, C)    VMEM — one-hot channel membership per row
    # gb_ref:  (2*C,)      SMEM — [gamma..., beta...]
    # out_ref: (N*C, H*W)  VMEM
    NC, HW = x_ref.shape
    half = K // 2

    xf = x_ref[...].astype(jnp.float32)                       # (NC, HW)
    w_all = w_ref[...]                                         # (NC, K*K)
    oh = oh_ref[...]                                           # (NC, C)

    # Hoisted boundary masks (built once, reused by all taps).  p = i*W + j.
    pos = jax.lax.broadcasted_iota(jnp.int32, (NC, HW), 1)
    if (W & (W - 1)) == 0:
        col = jnp.bitwise_and(pos, W - 1)                      # j = p mod W (W pow2)
    else:
        # TODO(synk): verify vector integer-remainder lowering for non-pow2 W.
        col = jnp.remainder(pos, W)
    h_ok = {}
    w_ok = {}
    for d in range(-half, half + 1):
        if d < 0:
            h_ok[d] = pos >= (-d) * W                          # i + d >= 0
            w_ok[d] = col >= -d                                # j + d >= 0
        elif d > 0:
            h_ok[d] = pos < (H - d) * W                        # i + d <= H-1
            w_ok[d] = col <= (W - 1 - d)                       # j + d <= W-1
        else:
            h_ok[d] = None
            w_ok[d] = None

    # Depthwise cross-correlation (== F.conv2d): 9 taps of the resident slab.
    # Each tap is an XLU lane rotation; wrapped lanes are always masked
    # (|dh*W + dw| <= W+1, and wraps land exactly on out-of-image positions).
    acc = jnp.zeros((NC, HW), jnp.float32)
    for kh in range(K):
        dh = kh - half
        for kw in range(K):
            dw = kw - half
            s = dh * W + dw                                    # flat-domain shift
            tap = xf if s == 0 else pltpu.roll(xf, (-s) % HW, 1)
            valid = None
            for m in (h_ok[dh], w_ok[dw]):
                if m is not None:
                    valid = m if valid is None else jnp.logical_and(valid, m)
            if valid is not None:
                tap = jnp.where(valid, tap, 0.0)
            t = kh * K + kw
            acc = acc + w_all[:, t:t + 1] * tap                # per-row weight column

    # BatchNorm2d (training mode: per-channel batch mean / biased variance),
    # folded to a per-row scale/shift.  Lane-reduce once, then fold the
    # (NC,1) partials per channel via the one-hot table.
    inv_cnt = 1.0 / float(N * HW)
    row_s = jnp.sum(acc, axis=1, keepdims=True)                # (NC,1)
    row_ss = jnp.sum(acc * acc, axis=1, keepdims=True)         # (NC,1)

    scale_rows = jnp.zeros((NC, 1), jnp.float32)
    shift_rows = jnp.zeros((NC, 1), jnp.float32)
    for c in range(C):
        m_c = oh[:, c:c + 1]                                   # (NC,1) membership
        mean_c = jnp.sum(row_s * m_c) * inv_cnt
        var_c = jnp.maximum(jnp.sum(row_ss * m_c) * inv_cnt - mean_c * mean_c, 0.0)
        scale_c = jax.lax.rsqrt(var_c + BN_EPS) * gb_ref[c]
        shift_c = gb_ref[C + c] - mean_c * scale_c
        scale_rows = scale_rows + scale_c * m_c
        shift_rows = shift_rows + shift_c * m_c

    out_ref[...] = jnp.maximum(acc * scale_rows + shift_rows, 0.0)   # ReLU


@jax.jit
def simplenet_forward(x, kernels, gamma, beta):
    N, C, H, W = x.shape
    HW = H * W
    NC = N * C

    # Free reshape of contiguous NCHW -> (N*C, H*W) rows; tiny param tables.
    x_rows = x.reshape(NC, HW).astype(jnp.float32)
    w_rows = jnp.tile(kernels.reshape(C, KSIZE * KSIZE).astype(jnp.float32), (N, 1))
    onehot = jnp.tile(jnp.eye(C, dtype=jnp.float32), (N, 1))          # (NC, C)
    gb = jnp.concatenate([gamma.astype(jnp.float32), beta.astype(jnp.float32)])

    kernel_fn = functools.partial(_smpconv_bn_relu_kernel,
                                  N=N, C=C, H=H, W=W, K=KSIZE)

    out_rows = pl.pallas_call(
        kernel_fn,
        out_shape=jax.ShapeDtypeStruct((NC, HW), jnp.float32),
        in_specs=[
            pl.BlockSpec(memory_space=pltpu.MemorySpace.VMEM),   # x rows
            pl.BlockSpec(memory_space=pltpu.MemorySpace.VMEM),   # per-row weights
            pl.BlockSpec(memory_space=pltpu.MemorySpace.VMEM),   # channel one-hot
            pl.BlockSpec(memory_space=pltpu.MemorySpace.SMEM),   # gamma|beta (1-D)
        ],
        out_specs=pl.BlockSpec(memory_space=pltpu.MemorySpace.VMEM),
    )(x_rows, w_rows, onehot, gb)

    return out_rows.reshape(N, C, H, W)


# ---------------------------------------------------------------------------
# Pure-JAX reference for correctness check
# ---------------------------------------------------------------------------
def reference_forward(x, kernels, gamma, beta):
    w = kernels[:, None, :, :]                                # (C,1,K,K) OIHW
    conv = jax.lax.conv_general_dilated(
        x, w, window_strides=(1, 1), padding=((1, 1), (1, 1)),
        dimension_numbers=("NCHW", "OIHW", "NCHW"),
        feature_group_count=PLANES)
    mean = jnp.mean(conv, axis=(0, 2, 3), keepdims=True)
    var = jnp.mean((conv - mean) ** 2, axis=(0, 2, 3), keepdims=True)
    y = (conv - mean) / jnp.sqrt(var + BN_EPS)
    y = y * gamma[None, :, None, None] + beta[None, :, None, None]
    return jax.nn.relu(y)


if __name__ == "__main__":
    key = jax.random.PRNGKey(0)
    k_x, k_wc, k_w = jax.random.split(key, 3)

    # deterministic parameter init (shapes from SMPConv.__init__)
    weight_coord = jax.random.truncated_normal(k_wc, -5.0, 5.0, (1, NPOINTS, 2),
                                               dtype=jnp.float32) * 0.2     # std=0.2, clipped
    radius = jnp.full((1, NPOINTS, 1, 1), 2.0 * (2.0 / KSIZE), jnp.float32)  # init_radius
    weights = jax.random.truncated_normal(k_w, -2.0, 2.0, (1, PLANES, NPOINTS),
                                          dtype=jnp.float32) * 0.02          # std=0.02
    gamma = jnp.ones((PLANES,), jnp.float32)   # BatchNorm2d weight init
    beta = jnp.zeros((PLANES,), jnp.float32)   # BatchNorm2d bias init

    kernels = make_kernels(weight_coord, radius, weights)      # (C, K, K)

    # input: NCHW, small shapes consistent with in_channels=3
    x = jax.random.normal(k_x, (2, PLANES, 16, 16), dtype=jnp.float32)

    out = simplenet_forward(x, kernels, gamma, beta)
    out = jax.block_until_ready(out)

    ref = reference_forward(x, kernels, gamma, beta)
    assert out.shape == ref.shape == (2, PLANES, 16, 16)
    assert jnp.allclose(out, ref, rtol=1e-4, atol=1e-4), "mismatch vs JAX reference"

    print("KERNEL_OK")
</pallas_src>

<mosaic_0001>
module attributes {stable_mosaic.version = 11 : i64} {
  func.func @_smpconv_bn_relu_kernel(%arg0: memref<6x256xf32, #tpu.memory_space<vmem>>, %arg1: memref<6x9xf32, #tpu.memory_space<vmem>>, %arg2: memref<6x3xf32, #tpu.memory_space<vmem>>, %arg3: memref<6xf32, #tpu.memory_space<smem>>, %arg4: memref<6x256xf32, #tpu.memory_space<vmem>>) attributes {dimension_semantics = [], scalar_prefetch = 0 : i64, scratch_operands = 0 : i64, tpu.core_type = #tpu.core_type<tc>} {
    %c0 = arith.constant 0 : index
    %c0_0 = arith.constant 0 : index
    %0 = vector.load %arg0[%c0, %c0_0] : memref<6x256xf32, #tpu.memory_space<vmem>>, vector<6x256xf32>
    %c0_1 = arith.constant 0 : index
    %c0_2 = arith.constant 0 : index
    %1 = vector.load %arg1[%c0_1, %c0_2] : memref<6x9xf32, #tpu.memory_space<vmem>>, vector<6x9xf32>
    %c0_3 = arith.constant 0 : index
    %c0_4 = arith.constant 0 : index
    %2 = vector.load %arg2[%c0_3, %c0_4] : memref<6x3xf32, #tpu.memory_space<vmem>>, vector<6x3xf32>
    %3 = tpu.iota {dimensions = array<i32: 1>} : vector<6x256xi32>
    %c15_i32 = arith.constant 15 : i32
    %4 = vector.broadcast %c15_i32 : i32 to vector<6x256xi32>
    %5 = arith.andi %3, %4 : vector<6x256xi32>
    %c16_i32 = arith.constant 16 : i32
    %6 = vector.broadcast %c16_i32 : i32 to vector<6x256xi32>
    %7 = arith.cmpi sge, %3, %6 : vector<6x256xi32>
    %c1_i32 = arith.constant 1 : i32
    %8 = vector.broadcast %c1_i32 : i32 to vector<6x256xi32>
    %9 = arith.cmpi sge, %5, %8 : vector<6x256xi32>
    %c240_i32 = arith.constant 240 : i32
    %10 = vector.broadcast %c240_i32 : i32 to vector<6x256xi32>
    %11 = arith.cmpi slt, %3, %10 : vector<6x256xi32>
    %c14_i32 = arith.constant 14 : i32
    %12 = vector.broadcast %c14_i32 : i32 to vector<6x256xi32>
    %13 = arith.cmpi sle, %5, %12 : vector<6x256xi32>
    %cst = arith.constant 0.000000e+00 : f32
    %14 = vector.broadcast %cst : f32 to vector<6x256xf32>
    %c17_i32 = arith.constant 17 : i32
    %15 = tpu.dynamic_rotate %0 by %c17_i32 dim 1 : vector<6x256xf32>, i32 -> vector<6x256xf32>
    %16 = arith.andi %7, %9 : vector<6x256xi1>
    %cst_5 = arith.constant 0.000000e+00 : f32
    %17 = vector.broadcast %cst_5 : f32 to vector<6x256xf32>
    %18 = arith.select %16, %15, %17 : vector<6x256xi1>, vector<6x256xf32>
    %19 = vector.extract_strided_slice %1 {offsets = [0, 0], sizes = [6, 1], strides = [1, 1]} : vector<6x9xf32> to vector<6x1xf32>
    %20 = vector.broadcast %19 : vector<6x1xf32> to vector<6x256xf32>
    %21 = arith.mulf %20, %18 : vector<6x256xf32>
    %22 = arith.addf %14, %21 : vector<6x256xf32>
    %c16_i32_6 = arith.constant 16 : i32
    %23 = tpu.dynamic_rotate %0 by %c16_i32_6 dim 1 : vector<6x256xf32>, i32 -> vector<6x256xf32>
    %cst_7 = arith.constant 0.000000e+00 : f32
    %24 = vector.broadcast %cst_7 : f32 to vector<6x256xf32>
    %25 = arith.select %7, %23, %24 : vector<6x256xi1>, vector<6x256xf32>
    %26 = vector.extract_strided_slice %1 {offsets = [0, 1], sizes = [6, 1], strides = [1, 1]} : vector<6x9xf32> to vector<6x1xf32>
    %27 = vector.broadcast %26 : vector<6x1xf32> to vector<6x256xf32>
    %28 = arith.mulf %27, %25 : vector<6x256xf32>
    %29 = arith.addf %22, %28 : vector<6x256xf32>
    %c15_i32_8 = arith.constant 15 : i32
    %30 = tpu.dynamic_rotate %0 by %c15_i32_8 dim 1 : vector<6x256xf32>, i32 -> vector<6x256xf32>
    %31 = arith.andi %7, %13 : vector<6x256xi1>
    %cst_9 = arith.constant 0.000000e+00 : f32
    %32 = vector.broadcast %cst_9 : f32 to vector<6x256xf32>
    %33 = arith.select %31, %30, %32 : vector<6x256xi1>, vector<6x256xf32>
    %34 = vector.extract_strided_slice %1 {offsets = [0, 2], sizes = [6, 1], strides = [1, 1]} : vector<6x9xf32> to vector<6x1xf32>
    %35 = vector.broadcast %34 : vector<6x1xf32> to vector<6x256xf32>
    %36 = arith.mulf %35, %33 : vector<6x256xf32>
    %37 = arith.addf %29, %36 : vector<6x256xf32>
    %c1_i32_10 = arith.constant 1 : i32
    %38 = tpu.dynamic_rotate %0 by %c1_i32_10 dim 1 : vector<6x256xf32>, i32 -> vector<6x256xf32>
    %cst_11 = arith.constant 0.000000e+00 : f32
    %39 = vector.broadcast %cst_11 : f32 to vector<6x256xf32>
    %40 = arith.select %9, %38, %39 : vector<6x256xi1>, vector<6x256xf32>
    %41 = vector.extract_strided_slice %1 {offsets = [0, 3], sizes = [6, 1], strides = [1, 1]} : vector<6x9xf32> to vector<6x1xf32>
    %42 = vector.broadcast %41 : vector<6x1xf32> to vector<6x256xf32>
    %43 = arith.mulf %42, %40 : vector<6x256xf32>
    %44 = arith.addf %37, %43 : vector<6x256xf32>
    %45 = vector.extract_strided_slice %1 {offsets = [0, 4], sizes = [6, 1], strides = [1, 1]} : vector<6x9xf32> to vector<6x1xf32>
    %46 = vector.broadcast %45 : vector<6x1xf32> to vector<6x256xf32>
    %47 = arith.mulf %46, %0 : vector<6x256xf32>
    %48 = arith.addf %44, %47 : vector<6x256xf32>
    %c255_i32 = arith.constant 255 : i32
    %49 = tpu.dynamic_rotate %0 by %c255_i32 dim 1 : vector<6x256xf32>, i32 -> vector<6x256xf32>
    %cst_12 = arith.constant 0.000000e+00 : f32
    %50 = vector.broadcast %cst_12 : f32 to vector<6x256xf32>
    %51 = arith.select %13, %49, %50 : vector<6x256xi1>, vector<6x256xf32>
    %52 = vector.extract_strided_slice %1 {offsets = [0, 5], sizes = [6, 1], strides = [1, 1]} : vector<6x9xf32> to vector<6x1xf32>
    %53 = vector.broadcast %52 : vector<6x1xf32> to vector<6x256xf32>
    %54 = arith.mulf %53, %51 : vector<6x256xf32>
    %55 = arith.addf %48, %54 : vector<6x256xf32>
    %c241_i32 = arith.constant 241 : i32
    %56 = tpu.dynamic_rotate %0 by %c241_i32 dim 1 : vector<6x256xf32>, i32 -> vector<6x256xf32>
    %57 = arith.andi %11, %9 : vector<6x256xi1>
    %cst_13 = arith.constant 0.000000e+00 : f32
    %58 = vector.broadcast %cst_13 : f32 to vector<6x256xf32>
    %59 = arith.select %57, %56, %58 : vector<6x256xi1>, vector<6x256xf32>
    %60 = vector.extract_strided_slice %1 {offsets = [0, 6], sizes = [6, 1], strides = [1, 1]} : vector<6x9xf32> to vector<6x1xf32>
    %61 = vector.broadcast %60 : vector<6x1xf32> to vector<6x256xf32>
    %62 = arith.mulf %61, %59 : vector<6x256xf32>
    %63 = arith.addf %55, %62 : vector<6x256xf32>
    %c240_i32_14 = arith.constant 240 : i32
    %64 = tpu.dynamic_rotate %0 by %c240_i32_14 dim 1 : vector<6x256xf32>, i32 -> vector<6x256xf32>
    %cst_15 = arith.constant 0.000000e+00 : f32
    %65 = vector.broadcast %cst_15 : f32 to vector<6x256xf32>
    %66 = arith.select %11, %64, %65 : vector<6x256xi1>, vector<6x256xf32>
    %67 = vector.extract_strided_slice %1 {offsets = [0, 7], sizes = [6, 1], strides = [1, 1]} : vector<6x9xf32> to vector<6x1xf32>
    %68 = vector.broadcast %67 : vector<6x1xf32> to vector<6x256xf32>
    %69 = arith.mulf %68, %66 : vector<6x256xf32>
    %70 = arith.addf %63, %69 : vector<6x256xf32>
    %c239_i32 = arith.constant 239 : i32
    %71 = tpu.dynamic_rotate %0 by %c239_i32 dim 1 : vector<6x256xf32>, i32 -> vector<6x256xf32>
    %72 = arith.andi %11, %13 : vector<6x256xi1>
    %cst_16 = arith.constant 0.000000e+00 : f32
    %73 = vector.broadcast %cst_16 : f32 to vector<6x256xf32>
    %74 = arith.select %72, %71, %73 : vector<6x256xi1>, vector<6x256xf32>
    %75 = vector.extract_strided_slice %1 {offsets = [0, 8], sizes = [6, 1], strides = [1, 1]} : vector<6x9xf32> to vector<6x1xf32>
    %76 = vector.broadcast %75 : vector<6x1xf32> to vector<6x256xf32>
    %77 = arith.mulf %76, %74 : vector<6x256xf32>
    %78 = arith.addf %70, %77 : vector<6x256xf32>
    %cst_17 = arith.constant dense<0.000000e+00> : vector<6xf32>
    %79 = vector.multi_reduction <add>, %78, %cst_17 [1] : vector<6x256xf32> to vector<6xf32>
    %80 = vector.shape_cast %79 : vector<6xf32> to vector<6x1xf32>
    %81 = arith.mulf %78, %78 : vector<6x256xf32>
    %cst_18 = arith.constant dense<0.000000e+00> : vector<6xf32>
    %82 = vector.multi_reduction <add>, %81, %cst_18 [1] : vector<6x256xf32> to vector<6xf32>
    %83 = vector.shape_cast %82 : vector<6xf32> to vector<6x1xf32>
    %cst_19 = arith.constant 0.000000e+00 : f32
    %84 = vector.broadcast %cst_19 : f32 to vector<6x1xf32>
    %cst_20 = arith.constant 0.000000e+00 : f32
    %85 = vector.broadcast %cst_20 : f32 to vector<6x1xf32>
    %86 = vector.extract_strided_slice %2 {offsets = [0, 0], sizes = [6, 1], strides = [1, 1]} : vector<6x3xf32> to vector<6x1xf32>
    %87 = arith.mulf %80, %86 : vector<6x1xf32>
    %88 = vector.shape_cast %87 : vector<6x1xf32> to vector<1x6x1xf32>
    %cst_21 = arith.constant dense<0.000000e+00> : vector<1xf32>
    %89 = vector.multi_reduction <add>, %88, %cst_21 [1, 2] : vector<1x6x1xf32> to vector<1xf32>
    %90 = vector.shape_cast %89 : vector<1xf32> to vector<1x1x1xf32>
    %91 = vector.extract %90[0, 0, 0] : f32 from vector<1x1x1xf32>
    %cst_22 = arith.constant 0.001953125 : f32
    %92 = arith.mulf %91, %cst_22 : f32
    %93 = arith.mulf %83, %86 : vector<6x1xf32>
    %94 = vector.shape_cast %93 : vector<6x1xf32> to vector<1x6x1xf32>
    %cst_23 = arith.constant dense<0.000000e+00> : vector<1xf32>
    %95 = vector.multi_reduction <add>, %94, %cst_23 [1, 2] : vector<1x6x1xf32> to vector<1xf32>
    %96 = vector.shape_cast %95 : vector<1xf32> to vector<1x1x1xf32>
    %97 = vector.extract %96[0, 0, 0] : f32 from vector<1x1x1xf32>
    %cst_24 = arith.constant 0.001953125 : f32
    %98 = arith.mulf %97, %cst_24 : f32
    %99 = arith.mulf %92, %92 : f32
    %100 = arith.subf %98, %99 : f32
    %cst_25 = arith.constant 0.000000e+00 : f32
    %101 = arith.maximumf %100, %cst_25 : f32
    %cst_26 = arith.constant 9.99999974E-6 : f32
    %102 = arith.addf %101, %cst_26 : f32
    %103 = math.rsqrt %102 : f32
    %c0_27 = arith.constant 0 : index
    %104 = memref.load %arg3[%c0_27] : memref<6xf32, #tpu.memory_space<smem>>
    %105 = arith.mulf %103, %104 : f32
    %c3 = arith.constant 3 : index
    %106 = memref.load %arg3[%c3] : memref<6xf32, #tpu.memory_space<smem>>
    %107 = arith.mulf %92, %105 : f32
    %108 = arith.subf %106, %107 : f32
    %109 = vector.broadcast %105 : f32 to vector<6x1xf32>
    %110 = arith.mulf %109, %86 : vector<6x1xf32>
    %111 = arith.addf %84, %110 : vector<6x1xf32>
    %112 = vector.broadcast %108 : f32 to vector<6x1xf32>
    %113 = arith.mulf %112, %86 : vector<6x1xf32>
    %114 = arith.addf %85, %113 : vector<6x1xf32>
    %115 = vector.extract_strided_slice %2 {offsets = [0, 1], sizes = [6, 1], strides = [1, 1]} : vector<6x3xf32> to vector<6x1xf32>
    %116 = arith.mulf %80, %115 : vector<6x1xf32>
    %117 = vector.shape_cast %116 : vector<6x1xf32> to vector<1x6x1xf32>
    %cst_28 = arith.constant dense<0.000000e+00> : vector<1xf32>
    %118 = vector.multi_reduction <add>, %117, %cst_28 [1, 2] : vector<1x6x1xf32> to vector<1xf32>
    %119 = vector.shape_cast %118 : vector<1xf32> to vector<1x1x1xf32>
    %120 = vector.extract %119[0, 0, 0] : f32 from vector<1x1x1xf32>
    %cst_29 = arith.constant 0.001953125 : f32
    %121 = arith.mulf %120, %cst_29 : f32
    %122 = arith.mulf %83, %115 : vector<6x1xf32>
    %123 = vector.shape_cast %122 : vector<6x1xf32> to vector<1x6x1xf32>
    %cst_30 = arith.constant dense<0.000000e+00> : vector<1xf32>
    %124 = vector.multi_reduction <add>, %123, %cst_30 [1, 2] : vector<1x6x1xf32> to vector<1xf32>
    %125 = vector.shape_cast %124 : vector<1xf32> to vector<1x1x1xf32>
    %126 = vector.extract %125[0, 0, 0] : f32 from vector<1x1x1xf32>
    %cst_31 = arith.constant 0.001953125 : f32
    %127 = arith.mulf %126, %cst_31 : f32
    %128 = arith.mulf %121, %121 : f32
    %129 = arith.subf %127, %128 : f32
    %cst_32 = arith.constant 0.000000e+00 : f32
    %130 = arith.maximumf %129, %cst_32 : f32
    %cst_33 = arith.constant 9.99999974E-6 : f32
    %131 = arith.addf %130, %cst_33 : f32
    %132 = math.rsqrt %131 : f32
    %c1 = arith.constant 1 : index
    %133 = memref.load %arg3[%c1] : memref<6xf32, #tpu.memory_space<smem>>
    %134 = arith.mulf %132, %133 : f32
    %c4 = arith.constant 4 : index
    %135 = memref.load %arg3[%c4] : memref<6xf32, #tpu.memory_space<smem>>
    %136 = arith.mulf %121, %134 : f32
    %137 = arith.subf %135, %136 : f32
    %138 = vector.broadcast %134 : f32 to vector<6x1xf32>
    %139 = arith.mulf %138, %115 : vector<6x1xf32>
    %140 = arith.addf %111, %139 : vector<6x1xf32>
    %141 = vector.broadcast %137 : f32 to vector<6x1xf32>
    %142 = arith.mulf %141, %115 : vector<6x1xf32>
    %143 = arith.addf %114, %142 : vector<6x1xf32>
    %144 = vector.extract_strided_slice %2 {offsets = [0, 2], sizes = [6, 1], strides = [1, 1]} : vector<6x3xf32> to vector<6x1xf32>
    %145 = arith.mulf %80, %144 : vector<6x1xf32>
    %146 = vector.shape_cast %145 : vector<6x1xf32> to vector<1x6x1xf32>
    %cst_34 = arith.constant dense<0.000000e+00> : vector<1xf32>
    %147 = vector.multi_reduction <add>, %146, %cst_34 [1, 2] : vector<1x6x1xf32> to vector<1xf32>
    %148 = vector.shape_cast %147 : vector<1xf32> to vector<1x1x1xf32>
    %149 = vector.extract %148[0, 0, 0] : f32 from vector<1x1x1xf32>
    %cst_35 = arith.constant 0.001953125 : f32
    %150 = arith.mulf %149, %cst_35 : f32
    %151 = arith.mulf %83, %144 : vector<6x1xf32>
    %152 = vector.shape_cast %151 : vector<6x1xf32> to vector<1x6x1xf32>
    %cst_36 = arith.constant dense<0.000000e+00> : vector<1xf32>
    %153 = vector.multi_reduction <add>, %152, %cst_36 [1, 2] : vector<1x6x1xf32> to vector<1xf32>
    %154 = vector.shape_cast %153 : vector<1xf32> to vector<1x1x1xf32>
    %155 = vector.extract %154[0, 0, 0] : f32 from vector<1x1x1xf32>
    %cst_37 = arith.constant 0.001953125 : f32
    %156 = arith.mulf %155, %cst_37 : f32
    %157 = arith.mulf %150, %150 : f32
    %158 = arith.subf %156, %157 : f32
    %cst_38 = arith.constant 0.000000e+00 : f32
    %159 = arith.maximumf %158, %cst_38 : f32
    %cst_39 = arith.constant 9.99999974E-6 : f32
    %160 = arith.addf %159, %cst_39 : f32
    %161 = math.rsqrt %160 : f32
    %c2 = arith.constant 2 : index
    %162 = memref.load %arg3[%c2] : memref<6xf32, #tpu.memory_space<smem>>
    %163 = arith.mulf %161, %162 : f32
    %c5 = arith.constant 5 : index
    %164 = memref.load %arg3[%c5] : memref<6xf32, #tpu.memory_space<smem>>
    %165 = arith.mulf %150, %163 : f32
    %166 = arith.subf %164, %165 : f32
    %167 = vector.broadcast %163 : f32 to vector<6x1xf32>
    %168 = arith.mulf %167, %144 : vector<6x1xf32>
    %169 = arith.addf %140, %168 : vector<6x1xf32>
    %170 = vector.broadcast %166 : f32 to vector<6x1xf32>
    %171 = arith.mulf %170, %144 : vector<6x1xf32>
    %172 = arith.addf %143, %171 : vector<6x1xf32>
    %173 = vector.broadcast %169 : vector<6x1xf32> to vector<6x256xf32>
    %174 = arith.mulf %78, %173 : vector<6x256xf32>
    %175 = vector.broadcast %172 : vector<6x1xf32> to vector<6x256xf32>
    %176 = arith.addf %174, %175 : vector<6x256xf32>
    %cst_40 = arith.constant 0.000000e+00 : f32
    %177 = vector.broadcast %cst_40 : f32 to vector<6x256xf32>
    %178 = arith.maximumf %176, %177 : vector<6x256xf32>
    %c0_41 = arith.constant 0 : index
    %c0_42 = arith.constant 0 : index
    %179 = vector.load %arg4[%c0_41, %c0_42] : memref<6x256xf32, #tpu.memory_space<vmem>>, vector<6x256xf32>
    tpu.vector_store %arg4[%c0_41, %c0_42], %178 {strides = array<i32>} : memref<6x256xf32, #tpu.memory_space<vmem>>, vector<6x256xf32>,
    return
  }
}

</mosaic_0001>

<bundles_post_ra>
// kernel: tile.12
= control target key start
LH: loop header
LB: loop body
LE: loop exit
PB: predicated region body
PF: predicated region fallthrough
CT: control target
= control target key end

     0   :  { %vm11_vm0 = vcmask 72704   ;;  %s42_s0 = inlined_call_operand.vmem [shape: f32[2,3,9], index: 0, kind: input, shape index: {}]   ;;  %s43_s1 = inlined_call_operand.vmem [shape: f32[6,9], index: 1, kind: output, shape index: {}]  }
   0x1   :  { %v18_v0 = vld [vmem:[%s42_s0 + $0x4] sm:$0xf]  ;;  %v8_v1 = vld [vmem:[%s42_s0] sm:$0xf] }
   0x2   :  { %7 = vst [vmem:[#allocation0 + $0x8] sm:$0xf] %v18_v0  ;;  %9 = vst [vmem:[#allocation0] sm:$0xf] %v8_v1 }
   0x9   :  { %v10_v2 = vld [vmem:[#allocation0] sm:$0x7]   ;;  %v14_v3 = vld [vmem:[#allocation0 + $0x8] sm:$0x7]  }
   0xa   :  { %12 = vst.msk [vmem:[%s43_s1] sm:$0x7] %vm11_vm0, %v10_v2   ;;  %19 = vst.msk [vmem:[%s43_s1 + $0x3] sm:$0x7] %vm11_vm0, %v14_v3  }

// kernel: tile.17
= control target key start
LH: loop header
LB: loop body
LE: loop exit
PB: predicated region body
PF: predicated region fallthrough
CT: control target
= control target key end

     0   :  { %vm16_vm0 = vcmask 23552   ;;  %vm22_vm1 = vcmask 48152   ;;  %s57_s0 = inlined_call_operand.vmem [shape: f32[2,3,3], index: 0, kind: input, shape index: {}]   ;;  %s58_s1 = inlined_call_operand.vmem [shape: f32[6,3], index: 1, kind: output, shape index: {}]  }
   0x1   :  { %v31_v0 = vld [vmem:[%s57_s0 + $0x4] sm:$0x3]  ;;  %v32_v1 = vld [vmem:[%s57_s0 + $0x2] sm:$0x3]  ;;  %v13_v2 = vld [vmem:[%s57_s0] sm:$0x3] }
   0x2   :  { %8 = vst [vmem:[#allocation1 + $0x10] sm:$0x3] %v31_v0  ;;  %12 = vst [vmem:[#allocation1 + $0x8] sm:$0x3] %v32_v1  ;;  %s34_s0 = smov 3  }
   0x3   :  { %14 = vst [vmem:[#allocation1] sm:$0x3] %v13_v2 }
   0xa   :  { %v19_v3 = vld [vmem:[#allocation1 + $0x1] ss:$8 sm:$0x7]   ;;  %v15_v4 = vld [vmem:[#allocation1] ss:$8 sm:$0x7]  }
   0xb   :  { %20 = vrot.lane.b32.xlu0 %v19_v3, %s34_s0  ;;  %17 = vst.msk [vmem:[#allocation0] sm:$0x7] %vm16_vm0, %v15_v4  }
  0x7d   :  { %v21_v5 = vpop.permute.xlu0 %20  }
  0x7e   :  { %23 = vst.msk [vmem:[#allocation0] sm:$0x7] %vm22_vm1, %v21_v5  }
  0x85   :  { %v27_v6 = vld [vmem:[#allocation0] sm:$0xf] }
  0x86   :  { %29 = vst [vmem:[%s58_s1] sm:$0xf] %v27_v6 }

// kernel: simplenet_forward.1
= control target key start
LH: loop header
LB: loop body
LE: loop exit
PB: predicated region body
PF: predicated region fallthrough
CT: control target
= control target key end

     0   :  { %9 = vsyncpa [#allocation3], 0  ;;  %s701_s0 = inlined_call_operand.vmem [shape: f32[6,256], index: 0, kind: input, shape index: {}]   ;;  %s702_s1 = inlined_call_operand.vmem [shape: f32[6,9], index: 1, kind: input, shape index: {}]   ;;  %s703_s2 = inlined_call_operand.vmem [shape: f32[6,3], index: 2, kind: input, shape index: {}]   ;;  %s704_s3 = inlined_call_operand.vmem [shape: f32[6], index: 3, kind: input, shape index: {}]   ;;  %s705_s4 = inlined_call_operand.vmem [shape: f32[6,256], index: 4, kind: output, shape index: {}]  }
   0x1   :  { %s22_s17 = sshll.u32 %s704_s3, 4  ;;  %s23_s17 = int_to_ptr.vmem [resolvable:$true] %s22_s17 }
   0x2   :  { %s449_s18 = scalar_lea.vmem %s23_s17, 16  ;;  %p454_p1 = scmp.lt.s32.totalorder %s23_s17, %s23_s17 }
   0x3   :  { %p450_p0 = scmp.ne.s32.totalorder %s23_s17, %s449_s18  ;;  %p455_p2 = scmp.lt.s32.totalorder %s449_s18, %s449_s18 }
   0x5   :  { %p456_p3 = por %p455_p2, %p454_p1 }
   0x7   :  { %p457_p4 = pnand %p456_p3, %p450_p0 }
   0x9   :  { %460 = shalt.err (!%p457_p4)
}
   0xa   :  { %s463_s19 = smov [#allocation2]  }
   0xb   :  { %25 = dma.vmem_to_smem %s23_s17, 16, %s463_s19, [#allocation3]  }
   0xc   :  { %461 = dma.done.wait [#allocation3], 16  }
   0xd   :  { %462 = vsyncadd [#allocation3], 4294967280 }
   0xe   :  { %29 = sfence }
   0xf   :  { %v32_v0 = vld [vmem:[%s702_s1] sm:$0x3f]  ;;  %v464_v1 = vmov 2   ;;  %v465_v2 = vmov 0   ;;  %v466_v3 = vmov 3   ;;  %v467_v4 = vmov 1  }
  0x10   :  { %434 = vset.pattern.permute.xlu1 %v464_v1  ;;  %432 = vset.pattern.permute.xlu0 %v465_v2  ;;  %v517_v5 = vld [vmem:[%s701_s0] sm:$0x3f]  ;;  %v522_v6 = vld [vmem:[%s701_s0 + $0x8] sm:$0x3f]  ;;  %s468_s1 = smov 17   ;;  %v469_v7 = vmov 4   ;;  %v34_v20 = vlaneseq }
  0x11   :  { %96 = vperm.xlu1 %434, %v32_v0   ;;  %60 = vperm.xlu0 %432, %v32_v0   ;;  %v470_v8 = vmov 5   ;;  %s471_s25 = smov 16   ;;  %s472_s26 = smov 15   ;;  %v473_v9 = vmov 7   ;;  %v475_v10 = vmov 6   ;;  %v478_v11 = vmov 8  }
  0x12   :  { %s474_s0 = smov 1   ;;  %s476_s27 = smov 127   ;;  %v544_v23 = vand.u32 127, %v34_v20 }
  0x13   :  { %s477_s28 = smov 113   ;;  %s479_s29 = smov 112  }
  0x14   :  { %s480_s30 = smov 111   ;;  %v549_v26 = vadd.s32 128, %v544_v23  ;;  %v37_v27 = vand.u32 15, %v544_v23  ;;  %vm71_vm0 = vcmp.lt.s32.totalorder %v544_v23, 16  ;;  %vm39_vm1 = vcmp.ge.s32.totalorder %v544_v23, 16  ;;  %s482_s13 = smov 0.0  }
  0x15   :  { %435 = vset.pattern.permute.xlu1 %v466_v3  ;;  %433 = vset.pattern.permute.xlu0 %v467_v4  ;;  %vm51_vm3 = vcmp.lt.s32.totalorder %v544_v23, 17  ;;  %vm88_vm5 = vcmp.lt.s32.totalorder %v544_v23, 15  ;;  %vm107_vm7 = vcmp.lt.s32.totalorder %v544_v23, 1  ;;  %vm132_vm11 = vcmp.lt.s32.totalorder %v544_v23, 127  ;;  %s390_s24 = sld [smem:[#allocation2 + $0x1]] }
  0x16   :  { %113 = vperm.xlu1 %435, %v32_v0   ;;  %77 = vperm.xlu0 %433, %v32_v0   ;;  %v38_v29 = vand.u32 15, %v549_v26  ;;  %vm555_vm2 = vcmp.ge.s32.totalorder %v37_v27, 1  ;;  %vm560_vm4 = vcmp.le.s32.totalorder %v37_v27, 14  ;;  %vm44_vm12 = vcmp.lt.s32.totalorder %v549_v26, 240 }
  0x17   :  { %vm571_vm6 = vmand %vm39_vm1, %vm555_vm2  ;;  %vm149_vm13 = vcmp.lt.s32.totalorder %v544_v23, 113  ;;  %vm168_vm15 = vcmp.lt.s32.totalorder %v544_v23, 112 }
  0x18   :  { %vm576_vm8 = vcmp.ge.s32.totalorder %v38_v29, 1  ;;  %vm582_vm9 = vmand %vm39_vm1, %vm560_vm4  ;;  %vm586_vm10 = vcmp.le.s32.totalorder %v38_v29, 14 }
  0x19   :  { %vm617_vm14 = vmand %vm44_vm12, %vm576_vm8 }
  0x1a   :  { %47 = vrot.lane.b32.xlu1 %v517_v5, %s468_s1  ;;  %49 = vrot.lane.b32.xlu0 %v522_v6, %s468_s1  ;;  %s391_s1 = sld [smem:[#allocation2 + $0x4]] }
  0x1b   :  { %436 = vset.pattern.permute.xlu1 %v469_v7  ;;  %437 = vset.pattern.permute.xlu0 %v470_v8 }
  0x1e   :  { %67 = vrot.lane.b32.xlu1 %v517_v5, %s471_s25  ;;  %69 = vrot.lane.b32.xlu0 %v522_v6, %s471_s25 }
  0x22   :  { %121 = vperm.xlu1 %436, %v32_v0   ;;  %84 = vrot.lane.b32.xlu0 %v517_v5, %s472_s26 }
  0x26   :  { %86 = vrot.lane.b32.xlu1 %v522_v6, %s472_s26  ;;  %138 = vperm.xlu0 %437, %v32_v0  }
  0x27   :  { %439 = vset.pattern.permute.xlu1 %v473_v9 }
  0x2a   :  { %103 = vrot.lane.b32.xlu1 %v517_v5, %s474_s0  ;;  %438 = vset.pattern.permute.xlu0 %v475_v10 }
  0x2b   :  { %157 = vperm.xlu0 %438, %v32_v0  }
  0x2e   :  { %105 = vrot.lane.b32.xlu1 %v522_v6, %s474_s0 }
  0x2f   :  { %130 = vrot.lane.b32.xlu0 %v522_v6, %s476_s27 }
  0x30   :  { %441 = vset.pattern.permute.xlu0 %v465_v2 }
  0x32   :  { %174 = vperm.xlu1 %439, %v32_v0  }
  0x33   :  { %145 = vrot.lane.b32.xlu0 %v517_v5, %s477_s28 }
  0x36   :  { %128 = vrot.lane.b32.xlu1 %v517_v5, %s476_s27 }
  0x37   :  { %440 = vset.pattern.permute.xlu1 %v478_v11  ;;  %164 = vrot.lane.b32.xlu0 %v517_v5, %s479_s29 }
  0x3a   :  { %193 = vperm.xlu1 %440, %v32_v0  }
  0x3b   :  { %181 = vrot.lane.b32.xlu0 %v517_v5, %s480_s30 }
  0x3e   :  { %147 = vrot.lane.b32.xlu1 %v522_v6, %s477_s28 }
  0x3f   :  { %442 = vset.pattern.permute.xlu1 %v465_v2 }
  0x42   :  { %166 = vrot.lane.b32.xlu1 %v522_v6, %s479_s29 }
  0x46   :  { %183 = vrot.lane.b32.xlu1 %v522_v6, %s480_s30 }
  0x90   :  { %v97_v12 = vpop.permute.xlu1 %96  ;;  %v61_v13 = vpop.permute.xlu0 %60 }
  0x95   :  { %v114_v14 = vpop.permute.xlu1 %113  ;;  %v78_v15 = vpop.permute.xlu0 %77 }
  0x99   :  { %v50_v16 = vpop.permute.xlu0 %49  ;;  %v48_v17 = vpop.permute.xlu1 %47 }
  0x9a   :  { %v53_v37 = vsel %vm51_vm3, %v50_v16, %v48_v17  ;;  %v52_v40 = vsel %vm51_vm3, %v48_v17, %v50_v16  ;;  %vm214_vm3 = vcmask 5120  }
  0x9b   :  { %v56_v47 = vsel %vm571_vm6, %v53_v37, 0.0  ;;  %v57_v51 = vsel %vm576_vm8, %v52_v40, 0.0 }
  0x9c   :  { %v63_v57 = vmul.f32 %v61_v13, %v56_v47  ;;  %v64_v60 = vmul.f32 %v61_v13, %v57_v51 }
  0x9d   :  { %v70_v18 = vpop.permute.xlu0 %69  ;;  %v68_v19 = vpop.permute.xlu1 %67 }
  0x9e   :  { %v73_v34 = vsel %vm71_vm0, %v70_v18, %v68_v19  ;;  %v72_v45 = vsel %vm71_vm0, %v68_v19, %v70_v18  ;;  %vm185_vm0 = vcmp.lt.s32.totalorder %v544_v23, 111 }
  0x9f   :  { %v74_v41 = vsel %vm39_vm1, %v73_v34, 0.0  ;;  %v81_v54 = vmul.f32 %v78_v15, %v72_v45  ;;  %vm189_vm1 = vmand %vm44_vm12, %vm586_vm10 }
  0xa0   :  { %v80_v52 = vmul.f32 %v78_v15, %v74_v41 }
  0xa1   :  { %v542_v21 = vpop.permute.xlu1 %121  ;;  %v85_v22 = vpop.permute.xlu0 %84  ;;  %v83_v2 = vadd.f32 %v81_v54, %v64_v60 }
  0xa2   :  { %v82_v63 = vadd.f32 %v80_v52, %v63_v57  ;;  %v124_v17 = vmul.f32 %v542_v21, %v517_v5  ;;  %v658_v57 = vld [vmem:[%s703_s2] sm:$0x3f]  ;;  %s481_s2 = smov 126  }
  0xa5   :  { %v87_v24 = vpop.permute.xlu1 %86  ;;  %v546_v25 = vpop.permute.xlu0 %138 }
  0xa6   :  { %v90_v39 = vsel %vm88_vm5, %v87_v24, %v85_v22  ;;  %v89_v43 = vsel %vm88_vm5, %v85_v22, %v87_v24  ;;  %v125_v22 = vmul.f32 %v542_v21, %v522_v6 }
  0xa7   :  { %v93_v48 = vsel %vm582_vm9, %v90_v39, 0.0  ;;  %v94_v53 = vsel %vm586_vm10, %v89_v43, 0.0 }
  0xa8   :  { %v99_v58 = vmul.f32 %v97_v12, %v93_v48  ;;  %v100_v61 = vmul.f32 %v97_v12, %v94_v53 }
  0xa9   :  { %v104_v28 = vpop.permute.xlu1 %103 }
  0xaa   :  { %v565_v33 = vpop.permute.xlu0 %157  ;;  %v101_v7 = vadd.f32 %v99_v58, %v82_v63  ;;  %v102_v9 = vadd.f32 %v100_v61, %v83_v2 }
  0xad   :  { %v106_v32 = vpop.permute.xlu1 %105 }
  0xae   :  { %v109_v46 = vsel %vm107_vm7, %v106_v32, %v104_v28  ;;  %v108_v49 = vsel %vm107_vm7, %v104_v28, %v106_v32  ;;  %v131_v50 = vpop.permute.xlu0 %130 }
  0xaf   :  { %v110_v55 = vsel %vm555_vm2, %v109_v46, 0.0  ;;  %v111_v59 = vsel %vm576_vm8, %v108_v49, 0.0 }
  0xb0   :  { %v116_v0 = vmul.f32 %v114_v14, %v110_v55  ;;  %v117_v3 = vmul.f32 %v114_v14, %v111_v59 }
  0xb1   :  { %v175_v44 = vpop.permute.xlu1 %174 }
  0xb2   :  { %v146_v62 = vpop.permute.xlu0 %145  ;;  %v118_v11 = vadd.f32 %v116_v0, %v101_v7  ;;  %v119_v13 = vadd.f32 %v117_v3, %v102_v9 }
  0xb4   :  { %v126_v28 = vadd.f32 %v124_v17, %v118_v11  ;;  %v127_v32 = vadd.f32 %v125_v22, %v119_v13 }
  0xb5   :  { %v129_v56 = vpop.permute.xlu1 %128 }
  0xb6   :  { %v133_v1 = vsel %vm132_vm11, %v129_v56, %v131_v50  ;;  %v134_v8 = vsel %vm132_vm11, %v131_v50, %v129_v56  ;;  %v165_v16 = vpop.permute.xlu0 %164 }
  0xb7   :  { %v135_v10 = vsel %vm560_vm4, %v133_v1, 0.0  ;;  %v136_v14 = vsel %vm586_vm10, %v134_v8, 0.0 }
  0xb8   :  { %v141_v18 = vmul.f32 %v546_v25, %v135_v10  ;;  %v142_v29 = vmul.f32 %v546_v25, %v136_v14 }
  0xb9   :  { %v194_v4 = vpop.permute.xlu1 %193 }
  0xba   :  { %v143_v35 = vadd.f32 %v141_v18, %v126_v28  ;;  %v182_v30 = vpop.permute.xlu0 %181  ;;  %v144_v38 = vadd.f32 %v142_v29, %v127_v32 }
  0xbd   :  { %v148_v15 = vpop.permute.xlu1 %147 }
  0xbe   :  { %v150_v19 = vsel %vm149_vm13, %v146_v62, %v148_v15  ;;  %v151_v20 = vsel %vm149_vm13, %v148_v15, %v146_v62 }
  0xbf   :  { %v154_v24 = vsel %vm555_vm2, %v150_v19, 0.0  ;;  %v155_v27 = vsel %vm617_vm14, %v151_v20, 0.0  ;;  %vm200_vm2 = vcmask 1045504  }
  0xc0   :  { %v160_v5 = vmul.f32 %v565_v33, %v154_v24  ;;  %v161_v36 = vmul.f32 %v565_v33, %v155_v27 }
  0xc1   :  { %v167_v34 = vpop.permute.xlu1 %166 }
  0xc2   :  { %v169_v37 = vsel %vm168_vm15, %v165_v16, %v167_v34  ;;  %v170_v6 = vsel %vm168_vm15, %v167_v34, %v165_v16  ;;  %v162_v39 = vadd.f32 %v160_v5, %v143_v35  ;;  %v163_v43 = vadd.f32 %v161_v36, %v144_v38 }
  0xc3   :  { %v172_v21 = vsel %vm44_vm12, %v170_v6, 0.0  ;;  %v177_v40 = vmul.f32 %v175_v44, %v169_v37 }
  0xc4   :  { %v178_v41 = vmul.f32 %v175_v44, %v172_v21 }
  0xc5   :  { %v184_v25 = vpop.permute.xlu1 %183  ;;  %v179_v48 = vadd.f32 %v177_v40, %v162_v39 }
  0xc6   :  { %v186_v33 = vsel %vm185_vm0, %v182_v30, %v184_v25  ;;  %v187_v45 = vsel %vm185_vm0, %v184_v25, %v182_v30  ;;  %v180_v49 = vadd.f32 %v178_v41, %v163_v43 }
  0xc7   :  { %v190_v46 = vsel %vm560_vm4, %v186_v33, 0.0  ;;  %v191_v47 = vsel %vm189_vm1, %v187_v45, 0.0 }
  0xc8   :  { %v196_v23 = vmul.f32 %v194_v4, %v190_v46  ;;  %v197_v50 = vmul.f32 %v194_v4, %v191_v47 }
  0xca   :  { %v645_v51 = vadd.f32 %v196_v23, %v179_v48  ;;  %v647_v44 = vadd.f32 %v197_v50, %v180_v49 }
  0xcc   :  { %v201_v26 = vsel %vm200_vm2, %v645_v51, 0.0  ;;  %v202_v42 = vsel %vm200_vm2, %v647_v44, 0.0  ;;  %v206_v52 = vmul.f32 %v645_v51, %v645_v51  ;;  %v207_v31 = vmul.f32 %v647_v44, %v647_v44 }
  0xcd   :  { %v203_v53 = vadd.f32 %v202_v42, %v201_v26 }
  0xce   :  { %v208_v54 = vsel %vm200_vm2, %v206_v52, 0.0  ;;  %v209_v55 = vsel %vm200_vm2, %v207_v31, 0.0 }
  0xcf   :  { %204 = vadd.xlane.f32.xlu0 %v203_v53  ;;  %v210_v56 = vadd.f32 %v209_v55, %v208_v54 }
  0xd1   :  { %211 = vadd.xlane.f32.xlu1 %v210_v56 }
 0x15c   :  { %v205_v58 = vpop.xlane.xlu0 %204 }
 0x15d   :  { %v213_v59 = vmul.f32 %v205_v58, %v658_v57 }
 0x15e   :  { %v212_v60 = vpop.xlane.xlu1 %211 }
 0x15f   :  { %v226_v61 = vmul.f32 %v212_v60, %v658_v57  ;;  %257 = vrot.lane.b32.xlu1 %v213_v59, %s476_s27  ;;  %v215_v62 = vsel %vm214_vm3, %v213_v59, 0.0 }
 0x160   :  { %216 = vadd.xlane.f32.xlu0 %v215_v62 }
 0x161   :  { %v227_v63 = vsel %vm214_vm3, %v226_v61, 0.0 }
 0x164   :  { %228 = vadd.xlane.f32.xlu0 %v227_v63 }
 0x17a   :  { %272 = vrot.lane.b32.xlu0 %v226_v61, %s476_s27 }
 0x1d1   :  { %v258_v0 = vpop.permute.xlu1 %257 }
 0x1d2   :  { %v260_v1 = vsel %vm214_vm3, %v258_v0, 0.0 }
 0x1d3   :  { %261 = vadd.xlane.f32.xlu1 %v260_v1 }
 0x1e4   :  { %312 = vrot.lane.b32.xlu1 %v213_v59, %s481_s2 }
 0x1ed   :  { %v217_v2 = vpop.xlane.xlu0 %216 }
 0x1ee   :  { %v218_v3 = vrot.slane %v217_v2, 4 }
 0x1f0   :  { %v219_v4 = vadd.f32 %v218_v3, %v217_v2 }
 0x1f1   :  { %v229_v7 = vpop.xlane.xlu0 %228 }
 0x1f2   :  { %v220_v8 = vrot.slane %v219_v4, 2  ;;  %v230_v9 = vrot.slane %v229_v7, 4 }
 0x1f4   :  { %v231_v10 = vadd.f32 %v230_v9, %v229_v7  ;;  %v221_v11 = vadd.f32 %v220_v8, %v219_v4 }
 0x1f5   :  { %v273_v12 = vpop.permute.xlu0 %272 }
 0x1f6   :  { %v232_v13 = vrot.slane %v231_v10, 2  ;;  %v275_v14 = vsel %vm214_vm3, %v273_v12, 0.0  ;;  %v222_v15 = vrot.slane %v221_v11, 1 }
 0x1f7   :  { %276 = vadd.xlane.f32.xlu0 %v275_v14 }
 0x1f8   :  { %v223_v16 = vadd.f32 %v222_v15, %v221_v11  ;;  %v233_v17 = vadd.f32 %v232_v13, %v231_v10 }
 0x1fa   :  { %394 = vpush %v223_v16  ;;  %v234_v18 = vrot.slane %v233_v17, 1 }
 0x1fc   :  { %v235_v19 = vadd.f32 %v234_v18, %v233_v17 }
 0x1fe   :  { %396 = vpush %v235_v19 }
 0x20d   :  { %326 = vrot.lane.b32.xlu0 %v226_v61, %s481_s2 }
 0x22b   :  { %s395_s7 = spop %394 }
 0x22c   :  { %s670_s8 = smul.f32 0.001953125, %s395_s7 }
 0x22e   :  { %s238_s9 = smul.f32 %s670_s8, %s670_s8 }
 0x22f   :  { %s397_s10 = spop %396 }
 0x230   :  { %s237_s11 = smul.f32 0.001953125, %s397_s10 }
 0x232   :  { %s239_s12 = ssub.f32 %s237_s11, %s238_s9 }
 0x234   :  { %s240_s14 = smax.f32 %s482_s13, %s239_s12  ;;  %s393_s12 = sld [smem:[#allocation2 + $0x5]] }
 0x235   :  { %s241_s15 = sadd.f32 1e-05, %s240_s14 }
 0x237   :  { %v242_v20 = vstv %s241_s15 }
 0x238   :  { %443 = vrsqrt.f32 %v242_v20 }
 0x242   :  { %v444_v22 = vpop.eup %443 }
 0x243   :  { %398 = vpush %v444_v22 }
 0x260   :  { %v262_v24 = vpop.xlane.xlu1 %261 }
 0x261   :  { %v263_v27 = vrot.slane %v262_v24, 4 }
 0x263   :  { %v264_v28 = vadd.f32 %v263_v27, %v262_v24 }
 0x264   :  { %v313_v29 = vpop.permute.xlu1 %312 }
 0x265   :  { %v265_v5 = vrot.slane %v264_v28, 2  ;;  %v315_v32 = vsel %vm214_vm3, %v313_v29, 0.0 }
 0x266   :  { %316 = vadd.xlane.f32.xlu1 %v315_v32 }
 0x267   :  { %v266_v34 = vadd.f32 %v265_v5, %v264_v28 }
 0x269   :  { %v267_v35 = vrot.slane %v266_v34, 1 }
 0x26b   :  { %v268_v36 = vadd.f32 %v267_v35, %v266_v34 }
 0x26d   :  { %400 = vpush %v268_v36 }
 0x274   :  { %s677_s16 = spop %398 }
 0x284   :  { %v277_v37 = vpop.xlane.xlu0 %276 }
 0x285   :  { %v278_v6 = vrot.slane %v277_v37, 4 }
 0x287   :  { %v279_v21 = vadd.f32 %v278_v6, %v277_v37 }
 0x288   :  { %v327_v30 = vpop.permute.xlu0 %326 }
 0x289   :  { %v280_v38 = vrot.slane %v279_v21, 2  ;;  %v329_v39 = vsel %vm214_vm3, %v327_v30, 0.0 }
 0x28a   :  { %330 = vadd.xlane.f32.xlu0 %v329_v39 }
 0x28b   :  { %v281_v40 = vadd.f32 %v280_v38, %v279_v21 }
 0x28d   :  { %v282_v41 = vrot.slane %v281_v40, 1 }
 0x28f   :  { %v283_v25 = vadd.f32 %v282_v41, %v281_v40 }
 0x291   :  { %402 = vpush %v283_v25 }
 0x29e   :  { %s401_s17 = spop %400 }
 0x29f   :  { %s270_s18 = smul.f32 0.001953125, %s401_s17 }
 0x2a1   :  { %s286_s19 = smul.f32 %s270_s18, %s270_s18 }
 0x2c2   :  { %s403_s20 = spop %402 }
 0x2c3   :  { %s285_s21 = smul.f32 0.001953125, %s403_s20  ;;  %s389_s20 = sld [smem:[#allocation2 + $0x3]] }
 0x2c5   :  { %s287_s3 = ssub.f32 %s285_s21, %s286_s19 }
 0x2c7   :  { %s288_s22 = smax.f32 %s482_s13, %s287_s3 }
 0x2c8   :  { %s289_s23 = sadd.f32 1e-05, %s288_s22 }
 0x2ca   :  { %v290_v43 = vstv %s289_s23 }
 0x2cb   :  { %445 = vrsqrt.f32 %v290_v43 }
 0x2d5   :  { %v446_v33 = vpop.eup %445 }
 0x2d6   :  { %404 = vpush %v446_v33 }
 0x2f3   :  { %v317_v45 = vpop.xlane.xlu1 %316 }
 0x2f4   :  { %v318_v46 = vrot.slane %v317_v45, 4 }
 0x2f6   :  { %v319_v47 = vadd.f32 %v318_v46, %v317_v45 }
 0x2f8   :  { %v320_v48 = vrot.slane %v319_v47, 2 }
 0x2fa   :  { %v321_v49 = vadd.f32 %v320_v48, %v319_v47 }
 0x2fc   :  { %v322_v23 = vrot.slane %v321_v49, 1 }
 0x2fe   :  { %v323_v50 = vadd.f32 %v322_v23, %v321_v49 }
 0x300   :  { %406 = vpush %v323_v50 }
 0x307   :  { %s405_s25 = spop %404 }
 0x308   :  { %s294_s26 = smul.f32 %s405_s25, %s390_s24 }
 0x30a   :  { %s296_s0 = smul.f32 %s294_s26, %s270_s18  ;;  %v298_v26 = vstv %s294_s26 }
 0x30b   :  { %v299_v42 = vmul.f32 %v298_v26, %v658_v57 }
 0x30c   :  { %s297_s28 = ssub.f32 %s391_s1, %s296_s0 }
 0x30d   :  { %301 = vrot.lane.b32.xlu1 %v299_v42, %s476_s27 }
 0x30e   :  { %v305_v52 = vstv %s297_s28 }
 0x30f   :  { %v306_v31 = vmul.f32 %v305_v52, %v658_v57 }
 0x311   :  { %308 = vrot.lane.b32.xlu0 %v306_v31, %s476_s27  ;;  %s392_s27 = sld [smem:[#allocation2 + $0x2]] }
 0x317   :  { %v331_v53 = vpop.xlane.xlu0 %330 }
 0x318   :  { %v332_v54 = vrot.slane %v331_v53, 4 }
 0x31a   :  { %v333_v55 = vadd.f32 %v332_v54, %v331_v53 }
 0x31c   :  { %v334_v56 = vrot.slane %v333_v55, 2 }
 0x31e   :  { %v335_v58 = vadd.f32 %v334_v56, %v333_v55 }
 0x320   :  { %v336_v59 = vrot.slane %v335_v58, 1 }
 0x322   :  { %v337_v60 = vadd.f32 %v336_v59, %v335_v58 }
 0x324   :  { %408 = vpush %v337_v60 }
 0x331   :  { %s407_s29 = spop %406 }
 0x332   :  { %s325_s30 = smul.f32 0.001953125, %s407_s29 }
 0x334   :  { %s340_s5 = smul.f32 %s325_s30, %s325_s30 }
 0x355   :  { %s409_s6 = spop %408 }
 0x356   :  { %s339_s7 = smul.f32 0.001953125, %s409_s6 }
 0x358   :  { %s341_s9 = ssub.f32 %s339_s7, %s340_s5 }
 0x35a   :  { %s342_s10 = smax.f32 %s482_s13, %s341_s9  ;;  %s245_s13 = sld [smem:[#allocation2]] }
 0x35b   :  { %s343_s11 = sadd.f32 1e-05, %s342_s10 }
 0x35d   :  { %v344_v61 = vstv %s343_s11 }
 0x35e   :  { %447 = vrsqrt.f32 %v344_v61 }
 0x360   :  { %s246_s19 = smul.f32 %s677_s16, %s245_s13 }
 0x362   :  { %s248_s21 = smul.f32 %s246_s19, %s670_s8  ;;  %v250_v3 = vstv %s246_s19 }
 0x363   :  { %v251_v7 = vmul.f32 %v250_v3, %v658_v57 }
 0x364   :  { %s249_s3 = ssub.f32 %s389_s20, %s248_s21 }
 0x366   :  { %v253_v8 = vstv %s249_s3 }
 0x367   :  { %v254_v12 = vmul.f32 %v253_v8, %v658_v57 }
 0x368   :  { %v448_v62 = vpop.eup %447 }
 0x369   :  { %410 = vpush %v448_v62 }
 0x37f   :  { %v302_v4 = vpop.permute.xlu1 %301 }
 0x380   :  { %v304_v9 = vadd.f32 %v302_v4, %v251_v7 }
 0x383   :  { %v309_v10 = vpop.permute.xlu0 %308 }
 0x384   :  { %v311_v14 = vadd.f32 %v309_v10, %v254_v12 }
 0x39a   :  { %s411_s14 = spop %410 }
 0x39b   :  { %s348_s15 = smul.f32 %s411_s14, %s392_s27 }
 0x39d   :  { %s350_s17 = smul.f32 %s348_s15, %s325_s30  ;;  %v352_v63 = vstv %s348_s15 }
 0x39e   :  { %v353_v0 = vmul.f32 %v352_v63, %v658_v57 }
 0x39f   :  { %s351_s18 = ssub.f32 %s393_s12, %s350_s17 }
 0x3a0   :  { %355 = vrot.lane.b32.xlu1 %v353_v0, %s481_s2 }
 0x3a1   :  { %v359_v1 = vstv %s351_s18 }
 0x3a2   :  { %v360_v2 = vmul.f32 %v359_v1, %v658_v57 }
 0x3a4   :  { %362 = vrot.lane.b32.xlu1 %v360_v2, %s481_s2 }
 0x412   :  { %v356_v11 = vpop.permute.xlu1 %355 }
 0x413   :  { %v358_v13 = vadd.f32 %v356_v11, %v304_v9 }
 0x415   :  { %368 = vperm.xlu0 %441, %v358_v13  }
 0x416   :  { %v363_v15 = vpop.permute.xlu1 %362 }
 0x417   :  { %v365_v16 = vadd.f32 %v363_v15, %v311_v14 }
 0x419   :  { %375 = vperm.xlu1 %442, %v365_v16  }
 0x494   :  { %v369_v17 = vpop.permute.xlu0 %368 }
 0x495   :  { %v371_v18 = vmul.f32 %v369_v17, %v645_v51  ;;  %v372_v19 = vmul.f32 %v369_v17, %v647_v44 }
 0x498   :  { %v376_v20 = vpop.permute.xlu1 %375 }
 0x499   :  { %v378_v22 = vadd.f32 %v376_v20, %v371_v18  ;;  %v379_v24 = vadd.f32 %v376_v20, %v372_v19 }
 0x49b   :  { %v380_v27 = vmax.f32 %v378_v22, 0.0  ;;  %v381_v28 = vmax.f32 %v379_v24, 0.0 }
 0x49d   :  { %382 = vst [vmem:[%s705_s4] sm:$0x3f] %v380_v27  ;;  %383 = vst [vmem:[%s705_s4 + $0x8] sm:$0x3f] %v381_v28 }
 0x49e   :  { %388 = vsyncpa [#allocation3], 1 }

</bundles_post_ra>
